<compile_context>
chip_gen: v7x
topology: tpu7x:2x2x1
jax: 0.10.0
libtpu: 0.0.40
codegen_flags: <defaults>
</compile_context>

<pallas_src>
import functools

import jax
import jax.numpy as jnp
from jax.experimental import pallas as pl
from jax.experimental.pallas import tpu as pltpu

HIDDEN_SIZE = 128
INPUT_SIZE = 45
OUTPUT_SIZE = 2
FC_PAD = 128   # fc weight columns zero-padded to one 128-lane tile (MXU tile)


def _round_up(n, m):
    return ((n + m - 1) // m) * m


def _gate_dtype_for_device():
    """bf16 VPU/EUP exists on v6e/v7x only; keep gate math f32 elsewhere."""
    try:
        kind = jax.devices()[0].device_kind.lower()
    except Exception:
        return jnp.float32
    return jnp.bfloat16 if ("v6" in kind or "v7" in kind) else jnp.float32


# ----------------------------------------------------------------------------
# Kernel
# ----------------------------------------------------------------------------
def bigru_kernel(x_ref, w_ih_ref, b_gates_ref, b_hn_ref,
                 w_fc_f_ref, w_fc_b_ref, b_fc_ref, out_ref, *, gate_dtype):
    H = HIDDEN_SIZE

    # Fused input projection for both directions: one bf16 MXU pass over the
    # shared LHS, f32 accumulation. Column layout of gi:
    #   [r_f | z_f | n_f | r_b | z_b | n_b], each 128 lanes wide.
    gi = jnp.dot(x_ref[...], w_ih_ref[...],
                 preferred_element_type=jnp.float32) + b_gates_ref[...]

    def gru_half(off, n_off):
        # PyTorch gate order (r, z, n); h_prev == 0 so the z*h_prev term drops.
        # b_ih + b_hh already folded into b_gates for r/z; b_hn stays r-gated.
        g = gi[:, off:off + 3 * H].astype(gate_dtype)
        r = jax.nn.sigmoid(g[:, 0 * H:1 * H])
        z = jax.nn.sigmoid(g[:, 1 * H:2 * H])
        n = jnp.tanh(g[:, 2 * H:3 * H]
                     + r * b_hn_ref[:, n_off:n_off + H].astype(gate_dtype))
        # h = (1 - z) * n; cast to bf16 -> it feeds a bf16 fc matmul.
        return ((1.0 - z) * n).astype(jnp.bfloat16)

    h_f = gru_half(0, 0)
    h_b = gru_half(3 * H, H)

    # fc over concat([h_f, h_b]) as two bf16 matmuls (avoids a lane concat),
    # f32 accumulation; only the 2 real lanes are biased and stored.
    acc = (jnp.dot(h_f, w_fc_f_ref[...], preferred_element_type=jnp.float32)
           + jnp.dot(h_b, w_fc_b_ref[...], preferred_element_type=jnp.float32))
    out_ref[...] = acc[:, :OUTPUT_SIZE] + b_fc_ref[...]   # raw logits (TB, 2)


# ----------------------------------------------------------------------------
# Wrapper
# ----------------------------------------------------------------------------
def bigru_forward(x, kp, *, tb=2048, gate_dtype=None):
    """x: (B, 45) float. kp: packed params from pack_params(). Returns (B, 2)."""
    if gate_dtype is None:
        gate_dtype = _gate_dtype_for_device()

    B = x.shape[0]
    TB = min(tb, _round_up(B, 16))            # sublane/bf16-friendly small tiles
    Bp = _round_up(B, TB)

    x = x.astype(jnp.bfloat16)                # halves HBM traffic of the stream
    if Bp != B:
        x = jnp.pad(x, ((0, Bp - B), (0, 0)))

    const = lambda i: (0, 0)                  # resident weights: DMA'd once

    logits = pl.pallas_call(
        functools.partial(bigru_kernel, gate_dtype=gate_dtype),
        out_shape=jax.ShapeDtypeStruct((Bp, OUTPUT_SIZE), jnp.float32),
        grid=(Bp // TB,),
        in_specs=[
            pl.BlockSpec((TB, INPUT_SIZE), lambda i: (i, 0)),      # x tile
            pl.BlockSpec((INPUT_SIZE, 6 * HIDDEN_SIZE), const),    # W_ih fused
            pl.BlockSpec((1, 6 * HIDDEN_SIZE), const),             # folded biases
            pl.BlockSpec((1, 2 * HIDDEN_SIZE), const),             # b_hn (f, b)
            pl.BlockSpec((HIDDEN_SIZE, FC_PAD), const),            # fc fwd half
            pl.BlockSpec((HIDDEN_SIZE, FC_PAD), const),            # fc bwd half
            pl.BlockSpec((1, OUTPUT_SIZE), const),                 # fc bias
        ],
        out_specs=pl.BlockSpec((TB, OUTPUT_SIZE), lambda i: (i, 0)),
        compiler_params=pltpu.CompilerParams(
            dimension_semantics=("parallel",),
            vmem_limit_bytes=32 * 1024 * 1024),
    )(x, kp["w_ih"], kp["b_gates"], kp["b_hn"],
      kp["w_fc_f"], kp["w_fc_b"], kp["b_fc"])

    # Final activation applied in the wrapper, on the 2 real lanes only.
    return jax.nn.sigmoid(logits[:B]) * 44.0 + 1.0


# ----------------------------------------------------------------------------
# Parameters (PyTorch-shaped) and kernel-layout packing
# ----------------------------------------------------------------------------
def init_params(key):
    """Deterministic synthetic parameters with nn.GRU / nn.Linear shapes."""
    H, I, O = HIDDEN_SIZE, INPUT_SIZE, OUTPUT_SIZE
    ks = jax.random.split(key, 10)
    s = 0.1
    rnd = lambda k, shape: (s * jax.random.normal(k, shape)).astype(jnp.float32)
    return {
        "weight_ih_l0": rnd(ks[0], (3 * H, I)),
        "weight_hh_l0": rnd(ks[1], (3 * H, H)),           # unused: h0==0, seq_len==1
        "bias_ih_l0": rnd(ks[2], (3 * H,)),
        "bias_hh_l0": rnd(ks[3], (3 * H,)),
        "weight_ih_l0_reverse": rnd(ks[4], (3 * H, I)),
        "weight_hh_l0_reverse": rnd(ks[5], (3 * H, H)),   # unused
        "bias_ih_l0_reverse": rnd(ks[6], (3 * H,)),
        "bias_hh_l0_reverse": rnd(ks[7], (3 * H,)),
        "fc_weight": rnd(ks[8], (O, 2 * H)),
        "fc_bias": rnd(ks[9], (O,)),
    }


def pack_params(p):
    """One-time offline repack into the kernel's fused / padded layout."""
    H, O = HIDDEN_SIZE, OUTPUT_SIZE
    # Fused (45, 768) input weight: [fwd r|z|n, bwd r|z|n] along the lane axis.
    w_ih = jnp.concatenate(
        [p["weight_ih_l0"].T, p["weight_ih_l0_reverse"].T], axis=1)

    def fold(b_ih, b_hh):
        # r/z gates get b_ih + b_hh; n gate gets only b_ih (b_hn is r-gated).
        return jnp.concatenate([b_ih[:2 * H] + b_hh[:2 * H], b_ih[2 * H:]])

    b_gates = jnp.concatenate(
        [fold(p["bias_ih_l0"], p["bias_hh_l0"]),
         fold(p["bias_ih_l0_reverse"], p["bias_hh_l0_reverse"])])[None, :]
    b_hn = jnp.concatenate(
        [p["bias_hh_l0"][2 * H:], p["bias_hh_l0_reverse"][2 * H:]])[None, :]

    # fc: Linear(2H, 2) -> transposed, split per direction, columns zero-padded
    # to one 128-lane MXU tile, stored bf16 for a single-pass matmul.
    w_fc = p["fc_weight"].T                                   # (2H, O)
    w_fc_f = jnp.zeros((H, FC_PAD), jnp.float32).at[:, :O].set(w_fc[:H])
    w_fc_b = jnp.zeros((H, FC_PAD), jnp.float32).at[:, :O].set(w_fc[H:])
    b_fc = p["fc_bias"][None, :].astype(jnp.float32)          # (1, 2)

    return {
        "w_ih": w_ih.astype(jnp.bfloat16),
        "b_gates": b_gates.astype(jnp.float32),
        "b_hn": b_hn.astype(jnp.float32),
        "w_fc_f": w_fc_f.astype(jnp.bfloat16),
        "w_fc_b": w_fc_b.astype(jnp.bfloat16),
        "b_fc": b_fc,
    }


# ----------------------------------------------------------------------------
# Pure-JAX references
# ----------------------------------------------------------------------------
def reference_forward(x, p):
    """Faithful f32 nn.GRU(seq_len=1, h0=0) + fc + sigmoid*44+1."""
    H = HIDDEN_SIZE
    hi = jax.lax.Precision.HIGHEST

    def gru_dir(w_ih, b_ih, b_hh):
        gi = jnp.dot(x, w_ih.T, precision=hi) + b_ih
        r = jax.nn.sigmoid(gi[:, :H] + b_hh[:H])
        z = jax.nn.sigmoid(gi[:, H:2 * H] + b_hh[H:2 * H])
        n = jnp.tanh(gi[:, 2 * H:] + r * b_hh[2 * H:])
        return (1.0 - z) * n

    h = jnp.concatenate(
        [gru_dir(p["weight_ih_l0"], p["bias_ih_l0"], p["bias_hh_l0"]),
         gru_dir(p["weight_ih_l0_reverse"], p["bias_ih_l0_reverse"],
                 p["bias_hh_l0_reverse"])], axis=1)
    logits = jnp.dot(h, p["fc_weight"].T, precision=hi) + p["fc_bias"]
    return jax.nn.sigmoid(logits) * 44.0 + 1.0


def reference_forward_matched(x, p, gate_dtype=jnp.float32):
    """Mirrors the kernel's dtype strategy (bf16 x / W_ih / h / W_fc, gate math
    in gate_dtype, f32 accumulation, f32 activation) in plain XLA."""
    H = HIDDEN_SIZE
    xq = x.astype(jnp.bfloat16)

    def gru_dir(w_ih, b_ih, b_hh):
        b = jnp.concatenate([b_ih[:2 * H] + b_hh[:2 * H], b_ih[2 * H:]])
        gi = (jnp.dot(xq, w_ih.astype(jnp.bfloat16).T,
                      preferred_element_type=jnp.float32) + b).astype(gate_dtype)
        r = jax.nn.sigmoid(gi[:, :H])
        z = jax.nn.sigmoid(gi[:, H:2 * H])
        n = jnp.tanh(gi[:, 2 * H:] + r * b_hh[2 * H:].astype(gate_dtype))
        return ((1.0 - z) * n).astype(jnp.bfloat16)

    h_f = gru_dir(p["weight_ih_l0"], p["bias_ih_l0"], p["bias_hh_l0"])
    h_b = gru_dir(p["weight_ih_l0_reverse"], p["bias_ih_l0_reverse"],
                  p["bias_hh_l0_reverse"])
    w_fc = p["fc_weight"].T.astype(jnp.bfloat16)              # (2H, 2)
    logits = (jnp.dot(h_f, w_fc[:H], preferred_element_type=jnp.float32)
              + jnp.dot(h_b, w_fc[H:], preferred_element_type=jnp.float32)
              + p["fc_bias"])
    return jax.nn.sigmoid(logits) * 44.0 + 1.0


if __name__ == "__main__":
    key = jax.random.PRNGKey(0)
    k_x, k_p = jax.random.split(key)

    B = 4
    x = jax.random.normal(k_x, (B, INPUT_SIZE), dtype=jnp.float32)
    params = init_params(k_p)
    kp = pack_params(params)

    gdt = _gate_dtype_for_device()
    out = jax.block_until_ready(bigru_forward(x, kp, gate_dtype=gdt))
    assert out.shape == (B, OUTPUT_SIZE), out.shape

    # Strict check vs. an XLA reference using the kernel's exact quantization.
    ref_q = reference_forward_matched(x, params, gate_dtype=gdt)
    tol = 2e-2 if gdt == jnp.float32 else 1.5e-1
    assert jnp.allclose(out, ref_q, atol=tol, rtol=1e-2), (out, ref_q)

    # Sanity check vs. full-f32 module semantics: bf16 streaming/fc error stays
    # small relative to the sigmoid*44+1 output range [1, 45].
    ref = reference_forward(x, params)
    assert jnp.allclose(out, ref, atol=0.6, rtol=0.05), (out, ref)

    print("KERNEL_OK")
</pallas_src>

<mosaic_0001>
module attributes {stable_mosaic.version = 11 : i64} {
  func.func @bigru_kernel(%arg0: i32, %arg1: memref<16x45xbf16, #tpu.memory_space<vmem>>, %arg2: memref<45x768xbf16, #tpu.memory_space<vmem>>, %arg3: memref<1x768xf32, #tpu.memory_space<vmem>>, %arg4: memref<1x256xf32, #tpu.memory_space<vmem>>, %arg5: memref<128x128xbf16, #tpu.memory_space<vmem>>, %arg6: memref<128x128xbf16, #tpu.memory_space<vmem>>, %arg7: memref<1x2xf32, #tpu.memory_space<vmem>>, %arg8: memref<16x2xf32, #tpu.memory_space<vmem>>) attributes {dimension_semantics = [#tpu.dimension_semantics<parallel>], iteration_bounds = array<i64: 1>, scalar_prefetch = 0 : i64, scratch_operands = 0 : i64, tpu.core_type = #tpu.core_type<tc>, window_params = [{transform_indices = @transform_0, window_bounds = array<i64: 16, 45>}, {pipeline_mode = #tpu.pipeline_mode<synchronous>, transform_indices = @transform_1, window_bounds = array<i64: 45, 768>}, {pipeline_mode = #tpu.pipeline_mode<synchronous>, transform_indices = @transform_2, window_bounds = array<i64: 1, 768>}, {pipeline_mode = #tpu.pipeline_mode<synchronous>, transform_indices = @transform_3, window_bounds = array<i64: 1, 256>}, {pipeline_mode = #tpu.pipeline_mode<synchronous>, transform_indices = @transform_4, window_bounds = array<i64: 128, 128>}, {pipeline_mode = #tpu.pipeline_mode<synchronous>, transform_indices = @transform_5, window_bounds = array<i64: 128, 128>}, {pipeline_mode = #tpu.pipeline_mode<synchronous>, transform_indices = @transform_6, window_bounds = array<i64: 1, 2>}, {transform_indices = @transform_7, window_bounds = array<i64: 16, 2>}]} {
    %c0 = arith.constant 0 : index
    %c0_0 = arith.constant 0 : index
    %0 = vector.load %arg1[%c0, %c0_0] : memref<16x45xbf16, #tpu.memory_space<vmem>>, vector<16x45xbf16>
    %c0_1 = arith.constant 0 : index
    %c0_2 = arith.constant 0 : index
    %1 = vector.load %arg2[%c0_1, %c0_2] : memref<45x768xbf16, #tpu.memory_space<vmem>>, vector<45x768xbf16>
    %cst = arith.constant dense<0.000000e+00> : vector<16x768xf32>
    %2 = tpu.matmul %0, %1, %cst {dimension_numbers = #tpu.dot_dimension_numbers<[1], [0], [0], [1], [0, 0, 1, 1], [], []>} : vector<16x45xbf16>, vector<45x768xbf16>, vector<16x768xf32> -> vector<16x768xf32>
    %c0_3 = arith.constant 0 : index
    %c0_4 = arith.constant 0 : index
    %3 = vector.load %arg3[%c0_3, %c0_4] : memref<1x768xf32, #tpu.memory_space<vmem>>, vector<1x768xf32>
    %4 = vector.broadcast %3 : vector<1x768xf32> to vector<16x768xf32>
    %5 = arith.addf %2, %4 : vector<16x768xf32>
    %6 = vector.extract_strided_slice %5 {offsets = [0, 0], sizes = [16, 384], strides = [1, 1]} : vector<16x768xf32> to vector<16x384xf32>
    %7 = vector.extract_strided_slice %6 {offsets = [0, 0], sizes = [16, 128], strides = [1, 1]} : vector<16x384xf32> to vector<16x128xf32>
    %8 = arith.negf %7 : vector<16x128xf32>
    %9 = math.exp %8 : vector<16x128xf32>
    %cst_5 = arith.constant 1.000000e+00 : f32
    %10 = vector.broadcast %cst_5 : f32 to vector<16x128xf32>
    %11 = arith.addf %10, %9 : vector<16x128xf32>
    %12 = arith.divf %10, %11 : vector<16x128xf32>
    %13 = vector.extract_strided_slice %6 {offsets = [0, 128], sizes = [16, 128], strides = [1, 1]} : vector<16x384xf32> to vector<16x128xf32>
    %14 = arith.negf %13 : vector<16x128xf32>
    %15 = math.exp %14 : vector<16x128xf32>
    %cst_6 = arith.constant 1.000000e+00 : f32
    %16 = vector.broadcast %cst_6 : f32 to vector<16x128xf32>
    %17 = arith.addf %16, %15 : vector<16x128xf32>
    %18 = arith.divf %16, %17 : vector<16x128xf32>
    %19 = vector.extract_strided_slice %6 {offsets = [0, 256], sizes = [16, 128], strides = [1, 1]} : vector<16x384xf32> to vector<16x128xf32>
    %c0_7 = arith.constant 0 : index
    %c0_8 = arith.constant 0 : index
    %20 = vector.load %arg4[%c0_7, %c0_8] : memref<1x256xf32, #tpu.memory_space<vmem>>, vector<1x128xf32>
    %21 = vector.broadcast %20 : vector<1x128xf32> to vector<16x128xf32>
    %22 = arith.mulf %12, %21 : vector<16x128xf32>
    %23 = arith.addf %19, %22 : vector<16x128xf32>
    %24 = math.tanh %23 : vector<16x128xf32>
    %cst_9 = arith.constant 1.000000e+00 : f32
    %25 = vector.broadcast %cst_9 : f32 to vector<16x128xf32>
    %26 = arith.subf %25, %18 : vector<16x128xf32>
    %27 = arith.mulf %26, %24 : vector<16x128xf32>
    %28 = arith.truncf %27 : vector<16x128xf32> to vector<16x128xbf16>
    %29 = vector.extract_strided_slice %5 {offsets = [0, 384], sizes = [16, 384], strides = [1, 1]} : vector<16x768xf32> to vector<16x384xf32>
    %30 = vector.extract_strided_slice %29 {offsets = [0, 0], sizes = [16, 128], strides = [1, 1]} : vector<16x384xf32> to vector<16x128xf32>
    %31 = arith.negf %30 : vector<16x128xf32>
    %32 = math.exp %31 : vector<16x128xf32>
    %cst_10 = arith.constant 1.000000e+00 : f32
    %33 = vector.broadcast %cst_10 : f32 to vector<16x128xf32>
    %34 = arith.addf %33, %32 : vector<16x128xf32>
    %35 = arith.divf %33, %34 : vector<16x128xf32>
    %36 = vector.extract_strided_slice %29 {offsets = [0, 128], sizes = [16, 128], strides = [1, 1]} : vector<16x384xf32> to vector<16x128xf32>
    %37 = arith.negf %36 : vector<16x128xf32>
    %38 = math.exp %37 : vector<16x128xf32>
    %cst_11 = arith.constant 1.000000e+00 : f32
    %39 = vector.broadcast %cst_11 : f32 to vector<16x128xf32>
    %40 = arith.addf %39, %38 : vector<16x128xf32>
    %41 = arith.divf %39, %40 : vector<16x128xf32>
    %42 = vector.extract_strided_slice %29 {offsets = [0, 256], sizes = [16, 128], strides = [1, 1]} : vector<16x384xf32> to vector<16x128xf32>
    %c0_12 = arith.constant 0 : index
    %c128 = arith.constant 128 : index
    %43 = vector.load %arg4[%c0_12, %c128] : memref<1x256xf32, #tpu.memory_space<vmem>>, vector<1x128xf32>
    %44 = vector.broadcast %43 : vector<1x128xf32> to vector<16x128xf32>
    %45 = arith.mulf %35, %44 : vector<16x128xf32>
    %46 = arith.addf %42, %45 : vector<16x128xf32>
    %47 = math.tanh %46 : vector<16x128xf32>
    %cst_13 = arith.constant 1.000000e+00 : f32
    %48 = vector.broadcast %cst_13 : f32 to vector<16x128xf32>
    %49 = arith.subf %48, %41 : vector<16x128xf32>
    %50 = arith.mulf %49, %47 : vector<16x128xf32>
    %51 = arith.truncf %50 : vector<16x128xf32> to vector<16x128xbf16>
    %c0_14 = arith.constant 0 : index
    %c0_15 = arith.constant 0 : index
    %52 = vector.load %arg5[%c0_14, %c0_15] : memref<128x128xbf16, #tpu.memory_space<vmem>>, vector<128x128xbf16>
    %cst_16 = arith.constant dense<0.000000e+00> : vector<16x128xf32>
    %53 = tpu.matmul %28, %52, %cst_16 {dimension_numbers = #tpu.dot_dimension_numbers<[1], [0], [0], [1], [0, 0, 1, 1], [], []>} : vector<16x128xbf16>, vector<128x128xbf16>, vector<16x128xf32> -> vector<16x128xf32>
    %c0_17 = arith.constant 0 : index
    %c0_18 = arith.constant 0 : index
    %54 = vector.load %arg6[%c0_17, %c0_18] : memref<128x128xbf16, #tpu.memory_space<vmem>>, vector<128x128xbf16>
    %cst_19 = arith.constant dense<0.000000e+00> : vector<16x128xf32>
    %55 = tpu.matmul %51, %54, %cst_19 {dimension_numbers = #tpu.dot_dimension_numbers<[1], [0], [0], [1], [0, 0, 1, 1], [], []>} : vector<16x128xbf16>, vector<128x128xbf16>, vector<16x128xf32> -> vector<16x128xf32>
    %56 = arith.addf %53, %55 : vector<16x128xf32>
    %57 = vector.extract_strided_slice %56 {offsets = [0, 0], sizes = [16, 2], strides = [1, 1]} : vector<16x128xf32> to vector<16x2xf32>
    %c0_20 = arith.constant 0 : index
    %c0_21 = arith.constant 0 : index
    %58 = vector.load %arg7[%c0_20, %c0_21] : memref<1x2xf32, #tpu.memory_space<vmem>>, vector<1x2xf32>
    %59 = vector.broadcast %58 : vector<1x2xf32> to vector<16x2xf32>
    %60 = arith.addf %57, %59 : vector<16x2xf32>
    %c0_22 = arith.constant 0 : index
    %c0_23 = arith.constant 0 : index
    %61 = vector.load %arg8[%c0_22, %c0_23] : memref<16x2xf32, #tpu.memory_space<vmem>>, vector<16x2xf32>
    tpu.vector_store %arg8[%c0_22, %c0_23], %60 {strides = array<i32>} : memref<16x2xf32, #tpu.memory_space<vmem>>, vector<16x2xf32>,
    return
  }
  func.func @transform_0(%arg0: i32) -> (i32, i32) {
    %c0_i32 = arith.constant 0 : i32
    %c0_i32_0 = arith.constant 0 : i32
    return %arg0, %c0_i32 : i32, i32
  }
  func.func @transform_1(%arg0: i32) -> (i32, i32) {
    %c0_i32 = arith.constant 0 : i32
    %c0_i32_0 = arith.constant 0 : i32
    %c0_i32_1 = arith.constant 0 : i32
    return %c0_i32, %c0_i32_0 : i32, i32
  }
  func.func @transform_2(%arg0: i32) -> (i32, i32) {
    %c0_i32 = arith.constant 0 : i32
    %c0_i32_0 = arith.constant 0 : i32
    %c0_i32_1 = arith.constant 0 : i32
    return %c0_i32, %c0_i32_0 : i32, i32
  }
  func.func @transform_3(%arg0: i32) -> (i32, i32) {
    %c0_i32 = arith.constant 0 : i32
    %c0_i32_0 = arith.constant 0 : i32
    %c0_i32_1 = arith.constant 0 : i32
    return %c0_i32, %c0_i32_0 : i32, i32
  }
  func.func @transform_4(%arg0: i32) -> (i32, i32) {
    %c0_i32 = arith.constant 0 : i32
    %c0_i32_0 = arith.constant 0 : i32
    %c0_i32_1 = arith.constant 0 : i32
    return %c0_i32, %c0_i32_0 : i32, i32
  }
  func.func @transform_5(%arg0: i32) -> (i32, i32) {
    %c0_i32 = arith.constant 0 : i32
    %c0_i32_0 = arith.constant 0 : i32
    %c0_i32_1 = arith.constant 0 : i32
    return %c0_i32, %c0_i32_0 : i32, i32
  }
  func.func @transform_6(%arg0: i32) -> (i32, i32) {
    %c0_i32 = arith.constant 0 : i32
    %c0_i32_0 = arith.constant 0 : i32
    %c0_i32_1 = arith.constant 0 : i32
    return %c0_i32, %c0_i32_0 : i32, i32
  }
  func.func @transform_7(%arg0: i32) -> (i32, i32) {
    %c0_i32 = arith.constant 0 : i32
    %c0_i32_0 = arith.constant 0 : i32
    return %arg0, %c0_i32 : i32, i32
  }
}

</mosaic_0001>

<bundles_post_ra>
// kernel: tpu_custom_call.1
= control target key start
LH: loop header
LB: loop body
LE: loop exit
PB: predicated region body
PF: predicated region fallthrough
CT: control target
= control target key end

     0   :  { %12 = vsyncpa [#allocation3], 0  ;;  %s1147_s0 = inlined_call_operand.hbm [shape: bf16[16,45], index: 0, kind: input, shape index: {}]   ;;  %s1148_s1 = inlined_call_operand.hbm [shape: bf16[45,768], index: 1, kind: input, shape index: {}]   ;;  %s1149_s2 = inlined_call_operand.vmem [shape: f32[1,768], index: 2, kind: input, shape index: {}]   ;;  %s1150_s3 = inlined_call_operand.vmem [shape: f32[1,256], index: 3, kind: input, shape index: {}]   ;;  %s1151_s4 = inlined_call_operand.hbm [shape: bf16[128,128], index: 4, kind: input, shape index: {}]   ;;  %s1152_s5 = inlined_call_operand.hbm [shape: bf16[128,128], index: 5, kind: input, shape index: {}]   ;;  %s1153_s6 = inlined_call_operand.vmem [shape: f32[1,2], index: 6, kind: input, shape index: {}]   ;;  %s1154_s7 = inlined_call_operand.vmem [shape: f32[16,2], index: 7, kind: output, shape index: {}]  }
   0x1   :  { %13 = vsyncpa [#allocation5], 0 }
   0x2   :  { %14 = vsyncpa [#allocation8], 0  ;;  %s988_s24 = smov [#allocation4]   ;;  %s894_s28 = scalar_lea.hbm %s1148_s1, 2304 }
   0x3   :  { %s32_s25 = sshll.u32 %s988_s24, 4  ;;  %p895_p0 = scmp.ne.s32.totalorder %s1148_s1, %s894_s28  ;;  %s33_s25 = int_to_ptr.vmem [resolvable:$true] %s32_s25 }
   0x4   :  { %p898_p1 = scmp.lt.u32.totalorder %s894_s28, %s1148_s1 }
   0x6   :  { %p900_p2 = pnand %p898_p1, %p895_p0 }
   0x8   :  { %903 = shalt.err (!%p900_p2)
}
   0x9   :  { %s904_s10 = scalar_lea.vmem %s33_s25, 2304  ;;  %p909_p4 = scmp.lt.s32.totalorder %s33_s25, %s33_s25 }
   0xa   :  { %p905_p3 = scmp.ne.s32.totalorder %s33_s25, %s904_s10  ;;  %p910_p5 = scmp.lt.s32.totalorder %s904_s10, %s904_s10 }
   0xc   :  { %p911_p6 = por %p910_p5, %p909_p4 }
   0xe   :  { %p912_p7 = pnand %p911_p6, %p905_p3 }
  0x10   :  { %915 = shalt.err (!%p912_p7)
}
  0x11   :  { %s989_s11 = smov 384   ;;  %s990_s12 = smov 24  }
  0x12   :  { %38 = dma.hbm_to_vmem [thread:$0]  %s1148_s1, 2304, %s33_s25, [#allocation5], %s989_s11, %s989_s11, %s990_s12  }
  0x13   :  { %s991_s15 = smov [#allocation2]   ;;  %s916_s19 = scalar_lea.hbm %s1147_s0, 128 }
  0x14   :  { %s20_s16 = sshll.u32 %s991_s15, 4  ;;  %p917_p8 = scmp.ne.s32.totalorder %s1147_s0, %s916_s19  ;;  %s21_s16 = int_to_ptr.vmem [resolvable:$true] %s20_s16 }
  0x15   :  { %p920_p9 = scmp.lt.u32.totalorder %s916_s19, %s1147_s0 }
  0x17   :  { %p922_p10 = pnand %p920_p9, %p917_p8 }
  0x19   :  { %925 = shalt.err (!%p922_p10)
}
  0x1a   :  { %s926_s24 = scalar_lea.vmem %s21_s16, 128  ;;  %p931_p12 = scmp.lt.s32.totalorder %s21_s16, %s21_s16 }
  0x1b   :  { %p927_p11 = scmp.ne.s32.totalorder %s21_s16, %s926_s24  ;;  %p932_p13 = scmp.lt.s32.totalorder %s926_s24, %s926_s24 }
  0x1d   :  { %p933_p0 = por %p932_p13, %p931_p12 }
  0x1f   :  { %p934_p1 = pnand %p933_p0, %p927_p11 }
  0x21   :  { %937 = shalt.err (!%p934_p1)
}
  0x22   :  { %s992_s1 = smov 64   ;;  %s993_s25 = smov 4  }
  0x23   :  { %26 = dma.hbm_to_vmem [thread:$0]  %s1147_s0, 128, %s21_s16, [#allocation3], %s992_s1, %s992_s1, %s993_s25  }
  0x24   :  { %s994_s28 = smov [#allocation6]   ;;  %s995_s30 = smov [#allocation7]  }
  0x25   :  { %s48_s29 = sshll.u32 %s994_s28, 4  ;;  %s60_s8 = sshll.u32 %s995_s30, 4  ;;  %s49_s29 = int_to_ptr.vmem [resolvable:$true] %s48_s29  ;;  %s1067_s8 = int_to_ptr.vmem [resolvable:$true] %s60_s8 }
  0x26   :  { %s938_s11 = scalar_lea.hbm %s1151_s4, 1024 }
  0x27   :  { %p939_p2 = scmp.ne.s32.totalorder %s1151_s4, %s938_s11  ;;  %p942_p3 = scmp.lt.u32.totalorder %s938_s11, %s1151_s4 }
  0x29   :  { %p944_p4 = pnand %p942_p3, %p939_p2 }
  0x2b   :  { %947 = shalt.err (!%p944_p4)
}
  0x2c   :  { %s948_s0 = scalar_lea.vmem %s49_s29, 1024  ;;  %p953_p6 = scmp.lt.s32.totalorder %s49_s29, %s49_s29 }
  0x2d   :  { %p949_p5 = scmp.ne.s32.totalorder %s49_s29, %s948_s0  ;;  %p954_p7 = scmp.lt.s32.totalorder %s948_s0, %s948_s0 }
  0x2f   :  { %p955_p8 = por %p954_p7, %p953_p6 }
  0x31   :  { %p956_p9 = pnand %p955_p8, %p949_p5 }
  0x33   :  { %959 = shalt.err (!%p956_p9)
}
  0x34   :  { %54 = dma.hbm_to_vmem [thread:$0]  %s1151_s4, 1024, %s49_s29, [#allocation5], %s992_s1, %s992_s1, %s993_s25  }
  0x35   :  { %s960_s20 = scalar_lea.hbm %s1152_s5, 1024 }
  0x36   :  { %p961_p10 = scmp.ne.s32.totalorder %s1152_s5, %s960_s20  ;;  %p964_p11 = scmp.lt.u32.totalorder %s960_s20, %s1152_s5 }
  0x38   :  { %p966_p12 = pnand %p964_p11, %p961_p10 }
  0x3a   :  { %969 = shalt.err (!%p966_p12)
}
  0x3b   :  { %s970_s26 = scalar_lea.vmem %s1067_s8, 1024  ;;  %p975_p0 = scmp.lt.s32.totalorder %s1067_s8, %s1067_s8 }
  0x3c   :  { %p971_p13 = scmp.ne.s32.totalorder %s1067_s8, %s970_s26  ;;  %p976_p1 = scmp.lt.s32.totalorder %s970_s26, %s970_s26 }
  0x3e   :  { %p977_p2 = por %p976_p1, %p975_p0 }
  0x40   :  { %p978_p3 = pnand %p977_p2, %p971_p13 }
  0x42   :  { %981 = shalt.err (!%p978_p3)
}
  0x43   :  { %66 = dma.hbm_to_vmem [thread:$0]  %s1152_s5, 1024, %s1067_s8, [#allocation8], %s992_s1, %s992_s1, %s993_s25  }
  0x44   :  { %982 = dma.done.wait [#allocation3], 128  }
  0x45   :  { %983 = vsyncadd [#allocation3], 4294967168 }
  0x46   :  { %984 = dma.done.wait [#allocation5], 3328  }
  0x47   :  { %985 = vsyncadd [#allocation5], 4294963968 }
  0x48   :  { %986 = dma.done.wait [#allocation8], 1024  }
  0x49   :  { %987 = vsyncadd [#allocation8], 4294966272  ;;  %v996_v0 = vmov 0   ;;  %vm227_vm0 = vcmask 1045504   ;;  %v810_v1 = vld [vmem:[#allocation4 + $0x4] ss:$24 sps:$4 sm:$0xff]   ;;  %v104_v46 = vlaneseq }
  0x4a   :  { %281 = vmatprep.mubr.bf16.mxu0 %v996_v0  ;;  %324 = vmatprep.mubr.bf16.mxu1 %v996_v0  ;;  %v812_v2 = vld [vmem:[#allocation4 + $0xc] ss:$24 sps:$4 sm:$0xff]   ;;  %vm228_vm1 = vcmask 1046528   ;;  %v814_v3 = vld [vmem:[#allocation4] ss:$24 sps:$4 sm:$0xff]   ;;  %v997_v5 = vmov 65535  }
  0x4b   :  { %249 = vmatprep.subr.bf16.mxu0 %v810_v1  ;;  %v815_v4 = vld [vmem:[#allocation4 + $0x8] ss:$24 sps:$4 sm:$0xff]   ;;  %v229_v6 = vsel %vm227_vm0, 4294967295, %v997_v5  ;;  %292 = vmatprep.subr.bf16.mxu1 %v812_v2  ;;  %v816_v7 = vld [vmem:[#allocation4 + $0x34] ss:$24 sps:$4 sm:$0xff]   ;;  %v828_v21 = vld [vmem:[#allocation2] sm:$0xff]  }
  0x4c   :  { %250 = vmatpush1.bf16.msra.mxu0 %v814_v3  ;;  %293 = vmatpush1.bf16.msra.mxu1 %v815_v4  ;;  %v818_v8 = vld [vmem:[#allocation4 + $0x3c] ss:$24 sps:$4 sm:$0xff]   ;;  %v820_v9 = vld [vmem:[#allocation4 + $0x30] ss:$24 sps:$4 sm:$0xff]   ;;  %v230_v11 = vsel %vm228_vm1, %v229_v6, 0  ;;  %vm223_vm2 = vcmask 367616  }
  0x4d   :  { %251 = vmatprep.subr.bf16.mxu0 %v816_v7  ;;  %v821_v10 = vld [vmem:[#allocation4 + $0x38] ss:$24 sps:$4 sm:$0xff]   ;;  %294 = vmatprep.subr.bf16.mxu1 %v818_v8  ;;  %v822_v12 = vld [vmem:[#allocation4 + $0x64] ss:$24 sps:$4 sm:$0x7f]   ;;  %v998_v30 = vmov 0.0  }
  0x4e   :  { %v824_v13 = vld [vmem:[#allocation4 + $0x6c] ss:$24 sps:$4 sm:$0x7f]   ;;  %v826_v14 = vld [vmem:[#allocation4 + $0x60] ss:$24 sps:$4 sm:$0x7f]   ;;  %v235_v15 = vand.u32 %v822_v12, %v230_v11 }
  0x4f   :  { %v827_v16 = vld [vmem:[#allocation4 + $0x68] ss:$24 sps:$4 sm:$0x7f]   ;;  %v241_v17 = vand.u32 %v824_v13, %v230_v11  ;;  %v232_v18 = vand.u32 %v826_v14, %v230_v11  ;;  %v831_v20 = vld [vmem:[#allocation4 + $0x14] ss:$24 sps:$4 sm:$0xff]   ;;  %v840_v32 = vld [vmem:[#allocation6 + $0x8] sm:$0xff]  }
  0x50   :  { %252 = vmatpush1.bf16.msra.mxu0 %v820_v9  ;;  %295 = vmatpush1.bf16.msra.mxu1 %v821_v10  ;;  %v238_v19 = vand.u32 %v827_v16, %v230_v11  ;;  %v829_v22 = vld [vmem:[#allocation4 + $0x10] ss:$24 sps:$4 sm:$0xff]   ;;  %v834_v23 = vld [vmem:[#allocation4 + $0x44] ss:$24 sps:$4 sm:$0xff]   ;;  %v832_v25 = vld [vmem:[#allocation4 + $0x40] ss:$24 sps:$4 sm:$0xff]  }
  0x51   :  { %253 = vmatprep.subr.bf16.mxu0 %v235_v15  ;;  %296 = vmatprep.subr.bf16.mxu1 %v241_v17  ;;  %v837_v24 = vld [vmem:[#allocation4 + $0x74] ss:$24 sps:$4 sm:$0x7f]   ;;  %v835_v26 = vld [vmem:[#allocation4 + $0x70] ss:$24 sps:$4 sm:$0x7f]  }
  0x52   :  { %v247_v27 = vand.u32 %v837_v24, %v230_v11  ;;  %v244_v28 = vand.u32 %v835_v26, %v230_v11  ;;  %v838_v29 = vld [vmem:[#allocation6] sm:$0xff]   ;;  %v841_v33 = vld [vmem:[#allocation7 + $0x8] sm:$0xff]   ;;  %v842_v34 = vld [vmem:[#allocation6 + $0x10] sm:$0xff]   ;;  %vm999_vm3 = vmmov 0   ;;  %v1107_v47 = vshrl.u32 %v104_v46, 7 }
  0x53   :  { %v839_v31 = vld [vmem:[#allocation7] sm:$0xff]   ;;  %v843_v35 = vld [vmem:[#allocation7 + $0x10] sm:$0xff]   ;;  %v844_v36 = vld [vmem:[#allocation6 + $0x18] sm:$0xff]   ;;  %vm681_vm4 = vcmask 15360  }
  0x54   :  { %254 = vmatpush1.bf16.msra.mxu0 %v232_v18  ;;  %297 = vmatpush1.bf16.msra.mxu1 %v238_v19  ;;  %v845_v37 = vld [vmem:[#allocation7 + $0x18] sm:$0xff]   ;;  %v846_v38 = vld [vmem:[#allocation6 + $0x20] sm:$0xff]   ;;  %v848_v40 = vld [vmem:[#allocation6 + $0x28] sm:$0xff]   ;;  %v106_v48 = vsub.s32 0, %v1107_v47  ;;  %v118_v50 = vsub.s32 3, %v1107_v47  ;;  %v110_v51 = vsub.s32 1, %v1107_v47 }
  0x55   :  { %335 = vmatprep.subr.bf16.mxu0 %v831_v20  ;;  %758 = vmatprep.subr.bf16.mxu1 %v998_v30  ;;  %v847_v39 = vld [vmem:[#allocation7 + $0x20] sm:$0xff]   ;;  %v849_v41 = vld [vmem:[#allocation7 + $0x28] sm:$0xff]   ;;  %v850_v42 = vld [vmem:[#allocation6 + $0x30] sm:$0xff]   ;;  %v122_v7 = vsub.s32 4, %v1107_v47 }
  0x56   :  { %v851_v43 = vld [vmem:[#allocation7 + $0x30] sm:$0xff]   ;;  %v852_v44 = vld [vmem:[#allocation6 + $0x38] sm:$0xff]   ;;  %v1113_v49 = vld [vmem:[%s1149_s2] sm:$0x3f] }
  0x57   :  { %710 = vmatmul.mubr.msk.bf16.vlgmr.msra.gmra.mrb[0].mxu0 %vm223_vm2, %v828_v21  ;;  %711 = vmatmul.mubr.msk.bf16.vlgmr.msra.gmra.mrb[0].mxu1 %vm223_vm2, %v828_v21  ;;  %v853_v45 = vld [vmem:[#allocation7 + $0x38] sm:$0xff]   ;;  %v107_v52 = vrot.slane %v1113_v49, %v106_v48  ;;  %v119_v53 = vrot.slane %v1113_v49, %v118_v50  ;;  %v111_v56 = vrot.slane %v1113_v49, %v110_v51 }
  0x58   :  { %336 = vmatpush1.bf16.msra.mxu0 %v829_v22  ;;  %367 = vmatprep.mubr.bf16.mxu0 %v996_v0  ;;  %v123_v11 = vrot.slane %v1113_v49, %v122_v7 }
  0x59   :  { %337 = vmatprep.subr.bf16.mxu0 %v834_v23  ;;  %759 = vmatpush3.bf16.msra.mxu1 %v839_v31  ;;  %v126_v31 = vsub.s32 5, %v1107_v47 }
  0x5a   :  { %760 = vmatprep.subr.bf16.mxu1 %v998_v30  ;;  %774 = vmatprep.mubr.msk.bf16.mxu1 %vm999_vm3, %v998_v30 }
  0x5c   :  { %338 = vmatpush1.bf16.msra.mxu0 %v832_v25 }
  0x5d   :  { %339 = vmatprep.subr.bf16.mxu0 %v247_v27  ;;  %761 = vmatpush3.bf16.msra.mxu1 %v841_v33 }
  0x5e   :  { %762 = vmatprep.subr.bf16.mxu1 %v998_v30 }
  0x60   :  { %340 = vmatpush1.bf16.msra.mxu0 %v244_v28  ;;  %v114_v28 = vsub.s32 2, %v1107_v47 }
  0x61   :  { %778 = vmatprep.subr.bf16.mxu0 %v998_v30  ;;  %763 = vmatpush3.bf16.msra.mxu1 %v843_v35  ;;  %v717_v35 = vld [vmem:[%s1150_s3] ss:$0 sm:$0xff] }
  0x62   :  { %764 = vmatprep.subr.bf16.mxu1 %v998_v30  ;;  %v115_v33 = vrot.slane %v1113_v49, %v114_v28 }
  0x63   :  { %712 = vmatmul.mubr.msk.bf16.vlgmr.msra.gmra.mrb[4].mxu0 %vm223_vm2, %v828_v21 }
  0x64   :  { %779 = vmatpush3.bf16.msra.mxu0 %v838_v29  ;;  %794 = vmatprep.mubr.msk.bf16.mxu0 %vm999_vm3, %v998_v30 }
  0x65   :  { %780 = vmatprep.subr.bf16.mxu0 %v998_v30  ;;  %765 = vmatpush3.bf16.msra.mxu1 %v845_v37  ;;  %v127_v37 = vrot.slane %v1113_v49, %v126_v31 }
  0x66   :  { %766 = vmatprep.subr.bf16.mxu1 %v998_v30 }
  0x68   :  { %781 = vmatpush3.bf16.msra.mxu0 %v840_v32 }
  0x69   :  { %782 = vmatprep.subr.bf16.mxu0 %v998_v30  ;;  %767 = vmatpush3.bf16.msra.mxu1 %v847_v39 }
  0x6a   :  { %768 = vmatprep.subr.bf16.mxu1 %v998_v30 }
  0x6c   :  { %783 = vmatpush3.bf16.msra.mxu0 %v842_v34 }
  0x6d   :  { %784 = vmatprep.subr.bf16.mxu0 %v998_v30  ;;  %769 = vmatpush3.bf16.msra.mxu1 %v849_v41  ;;  %v722_v41 = vld [vmem:[%s1150_s3 + $0x1] ss:$0 sm:$0xff] }
  0x6e   :  { %770 = vmatprep.subr.bf16.mxu1 %v998_v30 }
  0x70   :  { %785 = vmatpush3.bf16.msra.mxu0 %v844_v36 }
  0x71   :  { %786 = vmatprep.subr.bf16.mxu0 %v998_v30  ;;  %771 = vmatpush3.bf16.msra.mxu1 %v851_v43 }
  0x72   :  { %772 = vmatprep.subr.bf16.mxu1 %v998_v30 }
  0x74   :  { %787 = vmatpush3.bf16.msra.mxu0 %v846_v38 }
  0x75   :  { %788 = vmatprep.subr.bf16.mxu0 %v998_v30  ;;  %773 = vmatpush3.bf16.msra.mxu1 %v853_v45 }
  0x78   :  { %789 = vmatpush3.bf16.msra.mxu0 %v848_v40 }
  0x79   :  { %790 = vmatprep.subr.bf16.mxu0 %v998_v30 }
  0x7c   :  { %791 = vmatpush3.bf16.msra.mxu0 %v850_v42 }
  0x7d   :  { %792 = vmatprep.subr.bf16.mxu0 %v998_v30 }
  0x80   :  { %793 = vmatpush3.bf16.msra.mxu0 %v852_v44 }
 0x12a   :  { %v283_v54 = vpop.f32.mrb[0].mxu0  ;;  %v1119_v55 = vpop.f32.mrb[0].mxu1 }
 0x12b   :  { %v284_v57 = vadd.f32 %v283_v54, %v107_v52  ;;  %v285_v58 = vpop.f32.mrb[1].mxu0  ;;  %v328_v59 = vpop.f32.mrb[1].mxu1  ;;  %v327_v42 = vadd.f32 %v1119_v55, %v115_v33 }
 0x12c   :  { %v329_v60 = vadd.f32 %v328_v59, %v119_v53  ;;  %v287_v61 = vpop.f32.mrb[2].mxu0  ;;  %v1122_v62 = vpop.f32.mrb[2].mxu1  ;;  %v286_v3 = vadd.f32 %v285_v58, %v111_v56 }
 0x12d   :  { %v713_v63 = vmul.f32 -1.442695, %v284_v57  ;;  %v288_v0 = vadd.f32 %v287_v61, %v107_v52  ;;  %v289_v1 = vpop.f32.mrb[3].mxu0  ;;  %v332_v2 = vpop.f32.mrb[3].mxu1  ;;  %v331_v50 = vadd.f32 %v1122_v62, %v115_v33 }
 0x12e   :  { %v718_v4 = vmul.f32 -1.442695, %v329_v60  ;;  %v333_v5 = vadd.f32 %v332_v2, %v119_v53  ;;  %v290_v9 = vadd.f32 %v289_v1, %v111_v56  ;;  %v715_v10 = vmul.f32 -1.442695, %v286_v3 }
 0x12f   :  { %854 = vpow2.f32 %v713_v63  ;;  %v714_v6 = vmul.f32 -1.442695, %v288_v0 }
 0x130   :  { %v719_v8 = vmul.f32 -1.442695, %v333_v5  ;;  %856 = vpow2.f32 %v718_v4  ;;  %v716_v12 = vmul.f32 -1.442695, %v290_v9 }
 0x131   :  { %858 = vpow2.f32 %v714_v6 }
 0x132   :  { %860 = vpow2.f32 %v719_v8 }
 0x133   :  { %862 = vpow2.f32 %v715_v10 }
 0x134   :  { %864 = vpow2.f32 %v716_v12 }
 0x136   :  { %v369_v13 = vpop.f32.mrb[4].mxu0 }
 0x137   :  { %v370_v14 = vadd.f32 %v369_v13, %v123_v11  ;;  %v371_v15 = vpop.f32.mrb[5].mxu0 }
 0x138   :  { %v373_v16 = vpop.f32.mrb[6].mxu0  ;;  %v372_v47 = vadd.f32 %v371_v15, %v127_v37 }
 0x139   :  { %v855_v17 = vpop.eup %854  ;;  %v720_v18 = vmul.f32 -1.442695, %v370_v14  ;;  %v375_v19 = vpop.f32.mrb[7].mxu0  ;;  %v374_v21 = vadd.f32 %v373_v16, %v123_v11 }
 0x13a   :  { %v384_v20 = vadd.f32 1.0, %v855_v17  ;;  %v857_v22 = vpop.eup %856  ;;  %v376_v56 = vadd.f32 %v375_v19, %v127_v37  ;;  %v739_v17 = vld [vmem:[%s1153_s6] ss:$0 sm:$0xff] }
 0x13b   :  { %866 = vpow2.f32 %v720_v18  ;;  %v859_v23 = vpop.eup %858  ;;  %v426_v24 = vadd.f32 1.0, %v857_v22  ;;  %v721_v27 = vmul.f32 -1.442695, %v374_v21 }
 0x13c   :  { %868 = vrcp.f32 %v384_v20  ;;  %v385_v25 = vadd.f32 1.0, %v859_v23  ;;  %v861_v26 = vpop.eup %860 }
 0x13d   :  { %870 = vrcp.f32 %v426_v24  ;;  %v427_v29 = vadd.f32 1.0, %v861_v26  ;;  %v863_v30 = vpop.eup %862 }
 0x13e   :  { %872 = vrcp.f32 %v385_v25  ;;  %v865_v32 = vpop.eup %864  ;;  %v396_v34 = vadd.f32 1.0, %v863_v30 }
 0x13f   :  { %874 = vrcp.f32 %v427_v29  ;;  %v397_v39 = vadd.f32 1.0, %v865_v32 }
 0x140   :  { %876 = vpow2.f32 %v721_v27 }
 0x141   :  { %878 = vrcp.f32 %v396_v34 }
 0x145   :  { %v867_v36 = vpop.eup %866 }
 0x146   :  { %v869_v38 = vpop.eup %868  ;;  %v438_v40 = vadd.f32 1.0, %v867_v36 }
 0x147   :  { %v409_v43 = vmul.f32 %v869_v38, %v717_v35  ;;  %v871_v44 = vpop.eup %870 }
 0x148   :  { %880 = vrcp.f32 %v438_v40  ;;  %v873_v45 = vpop.eup %872  ;;  %v451_v48 = vmul.f32 %v871_v44, %v722_v41 }
 0x149   :  { %v411_v46 = vadd.f32 %v409_v43, %v327_v42  ;;  %v410_v49 = vmul.f32 %v873_v45, %v717_v35  ;;  %882 = vrcp.f32 %v397_v39  ;;  %v875_v51 = vpop.eup %874 }
 0x14a   :  { %v453_v52 = vadd.f32 %v451_v48, %v372_v47  ;;  %v877_v53 = vpop.eup %876  ;;  %v452_v57 = vmul.f32 %v875_v51, %v722_v41 }
 0x14b   :  { %884 = vtanh.f32 %v411_v46  ;;  %v412_v54 = vadd.f32 %v410_v49, %v331_v50  ;;  %v439_v55 = vadd.f32 1.0, %v877_v53  ;;  %v879_v59 = vpop.eup %878 }
 0x14c   :  { %886 = vtanh.f32 %v453_v52  ;;  %v454_v58 = vadd.f32 %v452_v57, %v376_v56  ;;  %v415_v63 = vsub.f32 1.0, %v879_v59 }
 0x14d   :  { %888 = vtanh.f32 %v412_v54 }
 0x14e   :  { %890 = vrcp.f32 %v439_v55 }
 0x14f   :  { %892 = vtanh.f32 %v454_v58 }
 0x152   :  { %v881_v60 = vpop.eup %880 }
 0x153   :  { %v883_v61 = vpop.eup %882  ;;  %v457_v62 = vsub.f32 1.0, %v881_v60 }
 0x154   :  { %v416_v3 = vsub.f32 1.0, %v883_v61 }
 0x155   :  { %v885_v0 = vpop.eup %884 }
 0x156   :  { %v417_v1 = vmul.f32 %v885_v0, %v415_v63  ;;  %v887_v2 = vpop.eup %886 }
 0x157   :  { %v889_v4 = vpop.eup %888  ;;  %v459_v5 = vmul.f32 %v887_v2, %v457_v62 }
 0x158   :  { %v891_v6 = vpop.eup %890  ;;  %v418_v7 = vmul.f32 %v889_v4, %v416_v3 }
 0x159   :  { %v893_v8 = vpop.eup %892  ;;  %v458_v9 = vsub.f32 1.0, %v891_v6 }
 0x15a   :  { %v419_v10 = vpack.c.bf16 %v418_v7, %v417_v1 }
 0x15b   :  { %v460_v11 = vmul.f32 %v893_v8, %v458_v9 }
 0x15c   :  { %795 = vmatmul.mubr.bf16.vlgmr.msra.gmra.mrb[8].mxu0 %v419_v10 }
 0x15d   :  { %v461_v12 = vpack.c.bf16 %v460_v11, %v459_v5 }
 0x15f   :  { %775 = vmatmul.mubr.bf16.vlgmr.msra.gmra.mrb[4].mxu1 %v461_v12 }
 0x22f   :  { %v665_v13 = vpop.f32.mrb[8].mxu0 }
 0x230   :  { %v796_v14 = vpop.f32.mrb[9].mxu0 }
 0x231   :  { %v668_v15 = vpop.f32.mrb[10].mxu0 }
 0x232   :  { %v576_v16 = vpop.f32.mrb[4].mxu1  ;;  %v797_v18 = vpop.f32.mrb[11].mxu0 }
 0x233   :  { %v666_v19 = vadd.f32 %v665_v13, %v576_v16  ;;  %v776_v20 = vpop.f32.mrb[5].mxu1 }
 0x234   :  { %v579_v21 = vpop.f32.mrb[6].mxu1 }
 0x235   :  { %v679_v22 = vadd.f32 %v739_v17, %v666_v19  ;;  %v669_v23 = vadd.f32 %v668_v15, %v579_v21  ;;  %v777_v24 = vpop.f32.mrb[7].mxu1 }
 0x237   :  { %682 = vst.msk [vmem:[%s1154_s7] sm:$0xff] %vm681_vm4, %v679_v22  ;;  %v680_v25 = vadd.f32 %v739_v17, %v669_v23 }
 0x239   :  { %683 = vst.msk [vmem:[%s1154_s7 + $0x8] sm:$0xff] %vm681_vm4, %v680_v25 }
 0x23a   :  { %688 = vsyncpa [#allocation3], 1 }
 0x23b   :  { %689 = vsyncpa [#allocation5], 1 }
 0x23c   :  { %690 = vsyncpa [#allocation8], 1 }

</bundles_post_ra>
